<compile_context>
chip_gen: v7x
topology: tpu7x:2x2x1
jax: 0.10.0
libtpu: 0.0.40
codegen_flags: <defaults>
</compile_context>

<pallas_src>
import math

import jax
import jax.numpy as jnp
from jax.experimental import pallas as pl
from jax.experimental.pallas import tpu as pltpu


def _cdiv(a: int, b: int) -> int:
    return -(-a // b)


def _round_up(x: int, m: int) -> int:
    return _cdiv(x, m) * m


def _sublane_multiple(dtype) -> int:
    # Native sublane packing: 8 rows for 4-byte, 16 for 2-byte, 32 for 1-byte dtypes.
    itemsize = jnp.dtype(dtype).itemsize
    return 8 * max(1, 4 // max(1, itemsize))


def _default_target_tile_bytes() -> int:
    # v5e: 16 MiB default scoped VMEM -> keep ~2 MiB x-tiles (~8 MiB live).
    # v6e / v7x (and unknown/newer): ~4 MiB x-tiles; vmem_limit_bytes is raised
    # explicitly in the wrapper when needed (still far below 64 MiB physical on v7x).
    try:
        kind = jax.devices()[0].device_kind.lower()
    except Exception:
        kind = ""
    if ("v5 lite" in kind) or ("v5e" in kind) or ("v5lite" in kind):
        return 2 * 1024 * 1024
    return 4 * 1024 * 1024


def _pick_tiles(B: int, F: int, dtype, target_tile_bytes: int):
    itemsize = jnp.dtype(dtype).itemsize
    sub = _sublane_multiple(dtype)
    target_elems = max(sub * 128, target_tile_bytes // itemsize)
    f_ceil = _round_up(F, 128)
    b_ceil = _round_up(B, sub)
    if f_ceil * sub <= target_elems:
        # Cover the full feature width (long contiguous DMA rows, lane-dense
        # unmasked stores), then add batch rows up to the tile budget.
        block_f = f_ceil
        rows = max(sub, (target_elems // block_f) // sub * sub)
        block_batch = min(rows, b_ceil)
    else:
        # Very wide feature dim: minimal row count, lane-dense feature tile.
        block_batch = sub
        block_f = max(128, min(f_ceil, (target_elems // block_batch) // 128 * 128))
    # v7x megacore: make sure there are >= 2 grid points to shard across the
    # two TensorCores (harmless on single-TC v5e/v6e).
    if _cdiv(B, block_batch) * _cdiv(F, block_f) == 1:
        if block_batch >= 2 * sub:
            block_batch //= 2
        elif block_f >= 256:
            block_f //= 2
    return block_batch, block_f


def _jumprelu_kernel(x_ref, logthr_ref, o_ref):
    x = x_ref[...]                      # (block_batch, block_f)
    thr = jnp.exp(logthr_ref[...])      # (1, block_f) -> broadcasts over rows
    # Matches PyTorch x * (x > threshold).float() (including NaN propagation).
    o_ref[...] = x * (x > thr).astype(x.dtype)


def jumprelu(x, log_threshold, *, target_tile_bytes=None):
    """JumpReLU forward.

    x:             (..., feature) float array
    log_threshold: (feature,)     float array
    """
    if target_tile_bytes is None:
        target_tile_bytes = _default_target_tile_bytes()

    orig_shape = x.shape
    F = orig_shape[-1]
    x2 = x.reshape(-1, F)
    B = x2.shape[0]
    itemsize = jnp.dtype(x2.dtype).itemsize

    block_batch, block_f = _pick_tiles(B, F, x2.dtype, target_tile_bytes)
    n_b = _cdiv(B, block_batch)
    n_f = _cdiv(F, block_f)

    # x / out are NOT padded: the grid is ragged and Pallas masks edge-block
    # writes (OOB reads only feed masked-off lanes, which is safe for this
    # elementwise op). Only the tiny threshold row is padded so its blocks are
    # always full (exp(0)=1 in the pad region, never stored).
    f_thr = n_f * block_f
    lt = log_threshold
    if f_thr != F:
        lt = jnp.pad(log_threshold, (0, f_thr - F))
    logthr_2d = lt.reshape(1, f_thr)
    thr_itemsize = jnp.dtype(logthr_2d.dtype).itemsize

    # VMEM budget: double-buffered x in + out tiles, plus the threshold block,
    # plus compiler slack. Only raise the limit when the most conservative
    # default (16 MiB on v5e) would not cover it.
    tile_bytes = block_batch * block_f * itemsize
    live_bytes = 4 * tile_bytes + 2 * block_f * thr_itemsize + (2 << 20)
    vmem_limit = live_bytes if live_bytes > (16 << 20) else None

    n_elems = B * F
    cost = pl.CostEstimate(
        flops=3 * n_elems,
        transcendentals=F,
        bytes_accessed=2 * n_elems * itemsize + F * thr_itemsize,
    )

    # Grid order (feature, batch): the batch axis iterates fastest, so the
    # threshold block index (0, j) is constant along the inner loop and the
    # threshold tile stays resident instead of being re-DMA'd every step.
    out = pl.pallas_call(
        _jumprelu_kernel,
        out_shape=jax.ShapeDtypeStruct((B, F), x2.dtype),
        grid_spec=pltpu.PrefetchScalarGridSpec(
            num_scalar_prefetch=0,
            grid=(n_f, n_b),
            in_specs=[
                pl.BlockSpec((block_batch, block_f), lambda j, i: (i, j)),
                pl.BlockSpec((1, block_f), lambda j, i: (0, j)),
            ],
            out_specs=pl.BlockSpec((block_batch, block_f), lambda j, i: (i, j)),
        ),
        compiler_params=pltpu.CompilerParams(
            dimension_semantics=("parallel", "parallel"),
            vmem_limit_bytes=vmem_limit,
        ),
        cost_estimate=cost,
    )(x2, logthr_2d)

    return out.reshape(orig_shape)


# TODO(synk): custom backward (RectangleFunction straight-through estimator) is not
# implemented; this script covers the forward pass only.


if __name__ == "__main__":
    feature_size = 128
    batch = 16
    bandwidth = 0.001  # only used in backward; forward ignores it

    key = jax.random.PRNGKey(0)
    x = jax.random.normal(key, (batch, feature_size), dtype=jnp.float32)

    # Deterministic parameter init, matching nn.Parameter(torch.full((F,), log(0.1)))
    log_threshold = jnp.full((feature_size,), math.log(0.1), dtype=jnp.float32)

    out = jax.block_until_ready(jumprelu(x, log_threshold))

    # Reference check in plain JAX
    thr = jnp.exp(log_threshold)[None, :]
    ref = x * (x > thr).astype(x.dtype)
    assert jnp.allclose(out, ref), "mismatch vs reference"

    # Ragged path: non-multiple batch and feature dims, multiple leading dims.
    f2 = 96
    x3 = jax.random.normal(jax.random.PRNGKey(0), (3, 5, f2), dtype=jnp.float32)
    lt2 = jnp.full((f2,), math.log(0.1), dtype=jnp.float32)
    out3 = jax.block_until_ready(jumprelu(x3, lt2))
    ref3 = x3 * (x3 > jnp.exp(lt2)[None, None, :]).astype(x3.dtype)
    assert jnp.allclose(out3, ref3), "mismatch vs reference (ragged path)"

    print("KERNEL_OK")
</pallas_src>

<mosaic_0001>
module attributes {stable_mosaic.version = 11 : i64} {
  func.func @_jumprelu_kernel(%arg0: i32, %arg1: i32, %arg2: memref<8x128xf32, #tpu.memory_space<vmem>>, %arg3: memref<1x128xf32, #tpu.memory_space<vmem>>, %arg4: memref<8x128xf32, #tpu.memory_space<vmem>>) attributes {dimension_semantics = [#tpu.dimension_semantics<parallel>, #tpu.dimension_semantics<parallel>], iteration_bounds = array<i64: 1, 2>, scalar_prefetch = 0 : i64, scratch_operands = 0 : i64, tpu.core_type = #tpu.core_type<tc>, window_params = [{transform_indices = @transform_0, window_bounds = array<i64: 8, 128>}, {transform_indices = @transform_1, window_bounds = array<i64: 1, 128>}, {transform_indices = @transform_2, window_bounds = array<i64: 8, 128>}]} {
    %c0 = arith.constant 0 : index
    %c0_0 = arith.constant 0 : index
    %0 = vector.load %arg2[%c0, %c0_0] : memref<8x128xf32, #tpu.memory_space<vmem>>, vector<8x128xf32>
    %c0_1 = arith.constant 0 : index
    %c0_2 = arith.constant 0 : index
    %1 = vector.load %arg3[%c0_1, %c0_2] : memref<1x128xf32, #tpu.memory_space<vmem>>, vector<1x128xf32>
    %2 = math.exp %1 : vector<1x128xf32>
    %3 = vector.broadcast %2 : vector<1x128xf32> to vector<8x128xf32>
    %4 = arith.cmpf ogt, %0, %3 : vector<8x128xf32>
    %5 = arith.extui %4 : vector<8x128xi1> to vector<8x128xi32>
    %6 = arith.sitofp %5 : vector<8x128xi32> to vector<8x128xf32>
    %7 = arith.mulf %0, %6 : vector<8x128xf32>
    %c0_3 = arith.constant 0 : index
    %c0_4 = arith.constant 0 : index
    %8 = vector.load %arg4[%c0_3, %c0_4] : memref<8x128xf32, #tpu.memory_space<vmem>>, vector<8x128xf32>
    tpu.vector_store %arg4[%c0_3, %c0_4], %7 {strides = array<i32>} : memref<8x128xf32, #tpu.memory_space<vmem>>, vector<8x128xf32>,
    return
  }
  func.func @transform_0(%arg0: i32, %arg1: i32) -> (i32, i32) {
    %c0_i32 = arith.constant 0 : i32
    return %arg1, %arg0 : i32, i32
  }
  func.func @transform_1(%arg0: i32, %arg1: i32) -> (i32, i32) {
    %c0_i32 = arith.constant 0 : i32
    %c0_i32_0 = arith.constant 0 : i32
    return %c0_i32, %arg0 : i32, i32
  }
  func.func @transform_2(%arg0: i32, %arg1: i32) -> (i32, i32) {
    %c0_i32 = arith.constant 0 : i32
    return %arg1, %arg0 : i32, i32
  }
}

</mosaic_0001>

<bundles_post_ra>
// kernel: tpu_custom_call.1
= control target key start
LH: loop header
LB: loop body
LE: loop exit
PB: predicated region body
PF: predicated region fallthrough
CT: control target
= control target key end

     0   :  { %7 = vsyncpa [#allocation3], 0  ;;  %s699_s0 = inlined_call_operand.hbm [shape: f32[16,128], index: 0, kind: input, shape index: {}]   ;;  %s700_s1 = inlined_call_operand.vmem [shape: f32[1,128], index: 1, kind: input, shape index: {}]   ;;  %s701_s2 = inlined_call_operand.hbm [shape: f32[16,128], index: 2, kind: output, shape index: {}]  }
   0x1   :  { %9 = vsyncpa [#allocation3 + $0x1], 0 }
   0x2   :  { %10 = vsyncpa [#allocation4], 0 }
   0x3   :  { %12 = vsyncpa [#allocation4 + $0x1], 0  ;;  %s524_s9 = smov 0   ;;  %s526_s10 = smov 0  }
   0x4   :  { %s528_s11 = smov 0   ;;  %s530_s12 = smov 0  }
   0x5   :  { %s532_s13 = smov 0   ;;  %s534_s14 = smov 0  }
   0x6 LB: > { %s312_s15 = sadd.s32 4294967295, %s504_s14   ;;  %s313_s16 = sadd.s32 4294967294, %s504_s14   ;;  %s504_s14 = sphi %s534_s14, %s18_s14   ;;  %s500_s13 = sphi %s532_s13, %s717_s13   ;;  %s496_s12 = sphi %s530_s12, %s716_s12   ;;  %s492_s11 = sphi %s528_s11, %s715_s11   ;;  %s488_s10 = sphi %s526_s10, %s714_s10   ;;  %s484_s9 = sphi %s524_s9, %s713_s9  }
   0x7   : > { %s27_s17 = sadd.s32 1, %s500_s13  ;;  %s39_s18 = sadd.s32 1, %s492_s11 }
   0x8   : > { %p28_p0 = scmp.ge.s32.totalorder %s27_s17, 2  ;;  %p46_p1 = scmp.ne.s32.totalorder %s492_s11, %s488_s10 }
   0x9   : > { %p47_p2 = scmp.eq.s32.totalorder %s504_s14, 0  ;;  %p52_p3 = scmp.ne.s32.totalorder %s488_s10, %s484_s9 }
   0xa   : > { %s719_s17 = smov (%p28_p0, %s27_s17), 0  ;;  %p53_p5 = scmp.eq.s32.totalorder %s312_s15, 0 }
   0xb   : > { %p565_p4 = por %p47_p2, %p46_p1  ;;  %s34_s20 = ssub.s32 %s500_s13, %s719_s17 }
   0xc   : > { %p104_p6 = scmp.eq.s32.totalorder %s312_s15, 1  ;;  %p37_p7 = scmp.eq.s32.totalorder %s34_s20, 0 }
   0xd   : > { %p571_p8 = por %p53_p5, %p52_p3  ;;  %p110_p10 = scmp.eq.s32.totalorder %s313_s16, 1 }
   0xe   : > { %p575_p9 = por %p104_p6, %p46_p1  ;;  %p339_p13 = scmp.lt.s32.totalorder %s504_s14, 2 }
   0xf   : > { %s580_s23 = scalar_select %p37_p7, %s492_s11, %s39_s18  }
  0x10   : > { %s705_s22 = scalar_select %p575_p9, 1, 0 }
  0x11   : > { %p582_p11 = por %p110_p10, %p52_p3  ;;  %s136_s25 = sand.u32 1, %s492_s11  }
  0x12   : > { %s317_s26 = sshll.u32 %s136_s25, 3  ;;  %s318_s27 = sshll.u32 %s500_s13, 7 }
  0x13   : > { %s706_s24 = scalar_select %p582_p11, 1, 0 }
  0x14   : > { %s593_s30 = scalar_lea.hbm %s699_s0, %s318_s27  ;;  %s140_s3 = scalar_lea.vmem [#allocation2], %s317_s26 }
  0x15   : > { %s148_s4 = sshll.u32 %s140_s3, 4  ;;  %p599_p0 = pnand %p339_p13, %p565_p4  ;;  %s595_s4 = int_to_ptr.vmem [resolvable:$true] %s148_s4 }
  0x16   : > { %s137_s6 = scalar_lea.sflag [#allocation3], %s136_s25  ;;  %s392_s7 = scalar_lea.hbm %s593_s30, 128 }
  0x17   : > { %p393_p3 = scmp.ne.s32.totalorder %s593_s30, %s392_s7  ;;  %p394_p5 = pneg %p599_p0 }
  0x18   : > { %s397_s16 = scalar_lea.hbm %s699_s0, 256  ;;  %p398_p4 = scmp.lt.u32.totalorder %s593_s30, %s699_s0 }
  0x19   : > { %p395_p6 = pnand %p394_p5, %p393_p3  ;;  %p399_p10 = scmp.lt.u32.totalorder %s397_s16, %s392_s7 }
  0x1a   : > { %p401_p12 = scmp.lt.u32.totalorder %s392_s7, %s593_s30 }
  0x1b   : > { %p396_p7 = pneg %p395_p6  ;;  %p400_p13 = por %p399_p10, %p398_p4 }
  0x1d   : > { %p402_p1 = por %p401_p12, %p400_p13 }
  0x1f   : > { %p403_p2 = pnand %p402_p1, %p396_p7 }
  0x21   : > { %406 = shalt.err (!%p403_p2)
}
  0x22   : > { %s407_s20 = scalar_lea.vmem %s595_s4, 128  ;;  %s506_s25 = smov [#allocation2]  }
  0x23   : > { %p408_p3 = scmp.ne.s32.totalorder %s595_s4, %s407_s20  ;;  %s412_s26 = sshll.u32 %s506_s25, 4  ;;  %s413_s26 = int_to_ptr.vmem [resolvable:$false] %s412_s26 }
  0x24   : > { %s414_s27 = scalar_lea.vmem %s413_s26, 256  ;;  %p415_p9 = scmp.lt.s32.totalorder %s595_s4, %s413_s26 }
  0x25   : > { %p410_p6 = pnand %p408_p3, %p394_p5  ;;  %p416_p4 = scmp.lt.s32.totalorder %s414_s27, %s407_s20 }
  0x27   : > { %p411_p11 = pneg %p410_p6  ;;  %p417_p10 = por %p416_p4, %p415_p9 }
  0x29   : > { %p418_p12 = pnand %p417_p10, %p411_p11 }
  0x2b   : > { %421 = shalt.err (!%p418_p12)
}
  0x2c   : > { %334 = dma.hbm_to_vmem [thread:$0]  (!%p599_p0), %s593_s30, 128, %s595_s4, %s137_s6  }
  0x2d   : > { %p708_p1 = scmp.lt.s32.totalorder %s504_s14, 3  ;;  %p709_p2 = scmp.ge.s32.totalorder %s504_s14, 1 }
  0x2f   : > { %p154_p5 = pnand %p709_p2, %p708_p1 }
  0x30   : > { %s635_s28 = sand.u32 (!%p154_p5), 1, %s488_s10  }
  0x31   : > { %157 = sbr.rel (%p154_p5) target bundleno = 91 (0x5b), region = 28  ;;  %s320_s29 = sshll.u32 (!%p154_p5), %s635_s28, 3 }
  0x32   : > { %s160_s3 = scalar_lea.sflag (!%p154_p5), [#allocation3], %s635_s28  ;;  %s163_s7 = scalar_lea.vmem (!%p154_p5), [#allocation2], %s320_s29 }
  0x38   : > { %475 = dma.done.wait (%p571_p8), %s160_s3, 128  }
  0x39   : > { %477 = vsyncadd (%p571_p8), %s160_s3, 4294967168  ;;  %v191_v0 = vld [vmem:[%s700_s1] sm:$0x1]  ;;  %v195_v2 = vlaneseq  ;;  %s186_s4 = scalar_lea.vmem [#allocation5], %s320_s29  ;;  %s324_s8 = sshll.u32 %s496_s12, 7  ;;  %v507_v8 = vmov 0.0  }
  0x3a   : > { %v192_v1 = vmul.f32 1.442695, %v191_v0  ;;  %v190_v6 = vld [vmem:[%s163_s7] sm:$0xff]  ;;  %s220_s6 = sshll.u32 %s186_s4, 4  ;;  %s652_s16 = scalar_lea.hbm %s701_s2, %s324_s8  ;;  %s647_s6 = int_to_ptr.vmem [resolvable:$true] %s220_s6 }
  0x3b   : > { %v196_v3 = vshrl.u32 %v195_v2, 7  ;;  %s206_s18 = scalar_lea.sflag [#allocation4], %s635_s28  ;;  %s422_s19 = scalar_lea.vmem %s647_s6, 128 }
  0x3c   : > { %390 = vpow2.f32 %v192_v1  ;;  %p423_p8 = scmp.ne.s32.totalorder %s647_s6, %s422_s19  ;;  %p710_p9 = scmp.ne.s32.totalorder %s705_s22, 0 }
  0x3d   : > { %v197_v4 = vsub.s32 0, %v196_v3  ;;  %s508_s12 = smov [#allocation5]  }
  0x3e   : > { %p424_p11 = pnand %p423_p8, %p710_p9  ;;  %s426_s20 = sshll.u32 %s508_s12, 4  ;;  %s427_s20 = int_to_ptr.vmem [resolvable:$false] %s426_s20 }
  0x3f   : > { %s428_s25 = scalar_lea.vmem %s427_s20, 256  ;;  %p429_p7 = scmp.lt.s32.totalorder %s647_s6, %s427_s20 }
  0x40   : > { %p425_p0 = pneg %p424_p11  ;;  %p430_p13 = scmp.lt.s32.totalorder %s428_s25, %s422_s19 }
  0x42   : > { %p431_p3 = por %p430_p13, %p429_p7 }
  0x44   : > { %p432_p6 = pnand %p431_p3, %p425_p0 }
  0x46   : > { %v391_v5 = vpop.eup %390 }
  0x47   : > { %v198_v7 = vrot.slane %v391_v5, %v197_v4 }
  0x49   : > { %vm200_vm0 = vcmp.gt.f32.partialorder %v190_v6, %v198_v7 }
  0x4a   : > { %v322_v9 = vsel %vm200_vm0, 1.0, %v507_v8 }
  0x4b   : > { %v203_v10 = vmul.f32 %v322_v9, %v190_v6 }
  0x4d   : > { %204 = vst [vmem:[%s186_s4] sm:$0xff] %v203_v10 }
  0x4e   : > { %435 = shalt.err (!%p432_p6)
}
  0x4f   : > { %s436_s26 = scalar_lea.hbm %s652_s16, 128  ;;  %s440_s29 = scalar_lea.hbm %s701_s2, 256 }
  0x50   : > { %p437_p4 = scmp.ne.s32.totalorder %s652_s16, %s436_s26  ;;  %p441_p1 = scmp.lt.u32.totalorder %s652_s16, %s701_s2 }
  0x51   : > { %p442_p2 = scmp.lt.u32.totalorder %s440_s29, %s436_s26  ;;  %p444_p8 = scmp.lt.u32.totalorder %s436_s26, %s652_s16 }
  0x52   : > { %p438_p10 = pnand %p437_p4, %p710_p9 }
  0x53   : > { %p443_p5 = por %p442_p2, %p441_p1 }
  0x54   : > { %p439_p12 = pneg %p438_p10 }
  0x55   : > { %p445_p11 = por %p444_p8, %p443_p5 }
  0x57   : > { %p446_p0 = pnand %p445_p11, %p439_p12 }
  0x59   : > { %449 = shalt.err (!%p446_p0)
}
  0x5a   : > { %329 = dma.vmem_to_hbm [thread:$0]  (%p710_p9), %s647_s6, 128, %s652_s16, %s206_s18  }
  0x5b PF: > { %s232_s5 = sand.u32 1, %s484_s9   ;;  %p711_p7 = scmp.ne.s32.totalorder %s706_s24, 0 }
  0x5c   : > { %p712_p13 = scmp.ge.s32.totalorder %s504_s14, 2  ;;  %s233_s30 = scalar_lea.sflag [#allocation4], %s232_s5 }
  0x5e   : > { %p336_p3 = pnand %p712_p13, %p711_p7 }
  0x60   : > { %479 = dma.done.wait (!%p336_p3), %s233_s30, 128  }
  0x61   : > { %481 = vsyncadd (!%p336_p3), %s233_s30, 4294967168  ;;  %s18_s14 = sadd.s32 1, %s504_s14   ;;  %s713_s9 = smov %s488_s10 }
  0x62   : > { %p15_p6 = scmp.ge.s32.totalorder %s18_s14, 4   ;;  %s714_s10 = smov %s492_s11 }
  0x63   : > { %s715_s11 = smov %s580_s23  ;;  %s716_s12 = smov %s500_s13 }
  0x64   : > { %s717_s13 = smov %s719_s17  ;;  %17 = sbr.rel (!%p15_p6) target bundleno = 6 (0x6), region = 76 }
  0x6b   :  { %238 = vsyncpa [#allocation3], 1 }
  0x6c   :  { %240 = vsyncpa [#allocation3 + $0x1], 1 }
  0x6d   :  { %241 = vsyncpa [#allocation4], 1 }
  0x6e   :  { %243 = vsyncpa [#allocation4 + $0x1], 1 }

</bundles_post_ra>
